<compile_context>
chip_gen: v7x
topology: tpu7x:2x2x1
jax: 0.10.0
libtpu: 0.0.40
codegen_flags: <defaults>
</compile_context>

<pallas_src>
import functools

import jax
import jax.numpy as jnp
from jax.experimental import pallas as pl
from jax.experimental.pallas import tpu as pltpu

KERNEL_SIZE = 3
LN_EPS = 1e-5
_LANE = 128


def _cdiv(a, b):
    return -(-a // b)


def _residual_cnn_block_kernel(x_ref, halo_ref, w_ref, p_ref, o_ref, *, seq_len, ragged):
    # x_ref:    (1, C, TL)   NCL tile: channels on sublanes, length on lanes (lane-dense)
    # halo_ref: (1, 1, C, 2) boundary columns [x[:, tile_start-1], x[:, tile_end]] (zero at edges)
    # w_ref:    (K, C, C)    w_ref[k][c_out, c_in] = conv weight tap k
    # p_ref:    (3, C, 1)    [conv bias, LN gamma, LN beta]
    # o_ref:    (1, C, TL)   output tile
    x = x_ref[0]                               # (C, TL) f32
    C, TL = x.shape
    halo = halo_ref[0, 0]                      # (C, 2)
    left = halo[:, 0:1]                        # column just left of the tile
    right = halo[:, 1:2]                       # column just right of the tile

    if ragged:
        # Last tile may extend past the sequence: zero the out-of-range lanes so the
        # k=+1 tap at the final valid position sees the conv's zero padding, and so
        # garbage pad data never enters the math (its output lanes are masked anyway).
        i = pl.program_id(1)
        valid = jnp.minimum(seq_len - i * TL, TL)
        lane = jax.lax.broadcasted_iota(jnp.int32, (C, TL), 1)
        x = jnp.where(lane < valid, x, 0.0)

    # k=3 "same" conv taps: halo-patched lane shifts (no full-tile iota / where selects).
    x_m1 = jnp.concatenate([left, x[:, : TL - 1]], axis=1)    # x[:, l-1]
    x_p1 = jnp.concatenate([x[:, 1:], right], axis=1)         # x[:, l+1]

    # Three accumulating (C,C)@(C,TL) MXU matmuls (no 3C x TL staging slab in VMEM).
    acc = jnp.dot(w_ref[1], x, preferred_element_type=jnp.float32)
    acc = acc + jnp.dot(w_ref[0], x_m1, preferred_element_type=jnp.float32)
    acc = acc + jnp.dot(w_ref[2], x_p1, preferred_element_type=jnp.float32)
    acc = acc + p_ref[0]                                       # conv bias

    # LayerNorm over channels == sublane reduction (lanes stay TL-dense).
    mean = jnp.mean(acc, axis=0, keepdims=True)
    cen = acc - mean
    var = jnp.mean(cen * cen, axis=0, keepdims=True)
    h = cen * jax.lax.rsqrt(var + LN_EPS)
    h = h * p_ref[1] + p_ref[2]                                # gamma, beta

    # Mish with a single transcendental:
    #   tanh(softplus(h)) = (u^2 + 2u) / (u^2 + 2u + 2), u = e^h,
    # evaluated via a = exp(-|h|) for stability; den = num + where(pos, 2a^2, 2).
    a = jnp.exp(-jnp.abs(h))
    a2 = a * a
    two_a = a + a
    pos = h >= 0.0
    num = jnp.where(pos, 1.0, a2) + two_a
    den = num + jnp.where(pos, a2 + a2, 2.0)
    h = h * (num / den)

    # Residual add; lane-dense store.
    o_ref[0] = x + h


def residual_cnn_block(x_ncl, w_pt, bias, gamma, beta, *, tile_l=2048):
    """x_ncl: (B, C, L) f32; w_pt: (C_out, C_in, 3) PyTorch Conv1d weight layout."""
    B, C, L = x_ncl.shape
    C_out, C_in, K = w_pt.shape
    assert K == KERNEL_SIZE and C_out == C and C_in == C, "kernel specialized for Conv1d(C, C, 3)"
    # NOTE: production shapes should use C % 8 == 0 (ideally C >= 64); tiny C wastes
    # sublanes / MXU rows on every TPU generation.

    orig_L = L
    if L < _LANE:
        # Tiny sequences: pad once to a single 128-lane tile (negligible bytes; keeps
        # the lane shifts and stores on full vregs).  Large L takes the pad-free path.
        x_in = jnp.pad(x_ncl, ((0, 0), (0, 0), (0, _LANE - L)))
        L_work, TL, NT, ragged, trim = _LANE, _LANE, 1, False, True
    else:
        x_in = x_ncl
        L_work = L
        # Lane tile: multiple of 128, <= L, and <= ~4 MiB per block so the double-buffered
        # in+out blocks stay ~16 MiB -- comfortable on v5e/v6e (128 MiB) and v7x (64 MiB).
        cap = max(_LANE, min(tile_l, (1 << 20) // max(C, 1)))
        cap = (cap // _LANE) * _LANE
        TL = min(cap, (L // _LANE) * _LANE)
        NT = _cdiv(L, TL)
        # Keep the grid >= 2 steps so both v7x TensorCores get parallel work.
        if B * NT < 2 and TL >= 2 * _LANE:
            TL //= 2
            NT = _cdiv(L, TL)
        ragged = (L % TL) != 0
        trim = False

    # Per-tile halo columns [x[:, i*TL - 1], x[:, (i+1)*TL]]; zeros at the sequence edges
    # (== the conv's zero padding).  Only B*C*NT*2 elements -> negligible HBM traffic.
    zcol = jnp.zeros((B, C, 1), x_in.dtype)
    if NT > 1:
        lcols = jnp.concatenate([zcol, x_in[:, :, TL - 1:(NT - 1) * TL:TL]], axis=2)
        rcols = jnp.concatenate([x_in[:, :, TL:(NT - 1) * TL + 1:TL], zcol], axis=2)
    else:
        lcols, rcols = zcol, zcol
    halos = jnp.transpose(jnp.stack([lcols, rcols], axis=-1), (0, 2, 1, 3))   # (B, NT, C, 2)

    # Conv weight as (K, C_out, C_in); bias/gamma/beta packed into one side input.
    w_k = jnp.transpose(w_pt, (2, 0, 1)).astype(jnp.float32)                  # (3, C, C)
    params = jnp.stack([bias, gamma, beta]).astype(jnp.float32).reshape(3, C, 1)

    block_bytes = C * TL * 4
    side_bytes = 2 * (w_k.size + params.size + C * 2) * 4
    vmem_limit = int(min(64 * 2**20,
                         max(32 * 2**20, 4 * block_bytes + side_bytes + (2 << 20))))

    kernel = functools.partial(_residual_cnn_block_kernel, seq_len=L_work, ragged=ragged)
    out = pl.pallas_call(
        kernel,
        out_shape=jax.ShapeDtypeStruct((B, C, L_work), jnp.float32),
        grid=(B, NT),
        in_specs=[
            pl.BlockSpec((1, C, TL), lambda b, i: (b, 0, i)),
            pl.BlockSpec((1, 1, C, 2), lambda b, i: (b, i, 0, 0)),
            pl.BlockSpec((KERNEL_SIZE, C, C), lambda b, i: (0, 0, 0)),
            pl.BlockSpec((3, C, 1), lambda b, i: (0, 0, 0)),
        ],
        out_specs=pl.BlockSpec((1, C, TL), lambda b, i: (b, 0, i)),
        compiler_params=pltpu.CompilerParams(
            dimension_semantics=("parallel", "parallel"),
            vmem_limit_bytes=vmem_limit,
        ),
    )(x_in, halos, w_k, params)

    return out[:, :, :orig_L] if trim else out


def _reference_forward(x_ncl, w_pt, bias, gamma, beta):
    """Pure-JAX reference matching the PyTorch module semantics."""
    out = jax.lax.conv_general_dilated(
        x_ncl, w_pt, window_strides=(1,), padding=((1, 1),),
        dimension_numbers=("NCH", "OIH", "NCH"))
    out = out + bias[None, :, None]
    out = jnp.transpose(out, (0, 2, 1))                # -> NLC for LayerNorm(channels)
    mean = out.mean(-1, keepdims=True)
    var = ((out - mean) ** 2).mean(-1, keepdims=True)
    out = (out - mean) / jnp.sqrt(var + LN_EPS) * gamma + beta
    out = jnp.transpose(out, (0, 2, 1))                # -> NCL
    sp = jnp.maximum(out, 0.0) + jnp.log1p(jnp.exp(-jnp.abs(out)))
    out = out * jnp.tanh(sp)
    return x_ncl + out


if __name__ == "__main__":
    B, C, L = 2, 4, 16
    key = jax.random.PRNGKey(0)
    kx, kw, kb = jax.random.split(key, 3)

    x = jax.random.normal(kx, (B, C, L), dtype=jnp.float32)
    # Deterministic synthetic parameters (shapes from nn.Conv1d(C, C, 3) + nn.LayerNorm(C)).
    w_pt = 0.1 * jax.random.normal(kw, (C, C, KERNEL_SIZE), dtype=jnp.float32)
    bias = 0.1 * jax.random.normal(kb, (C,), dtype=jnp.float32)
    gamma = jnp.ones((C,), dtype=jnp.float32)
    beta = jnp.zeros((C,), dtype=jnp.float32)

    out = residual_cnn_block(x, w_pt, bias, gamma, beta)
    jax.block_until_ready(out)

    ref = _reference_forward(x, w_pt, bias, gamma, beta)
    assert out.shape == (B, C, L)
    assert jnp.allclose(out, ref, atol=1e-4, rtol=1e-4), "mismatch vs reference"

    print("KERNEL_OK")
</pallas_src>

<mosaic_0001>
module attributes {stable_mosaic.version = 11 : i64} {
  func.func @_residual_cnn_block_kernel(%arg0: i32, %arg1: i32, %arg2: memref<1x4x128xf32, #tpu.memory_space<vmem>>, %arg3: memref<1x1x4x2xf32, #tpu.memory_space<vmem>>, %arg4: memref<3x4x4xf32, #tpu.memory_space<vmem>>, %arg5: memref<3x4x1xf32, #tpu.memory_space<vmem>>, %arg6: memref<1x4x128xf32, #tpu.memory_space<vmem>>) attributes {dimension_semantics = [#tpu.dimension_semantics<parallel>, #tpu.dimension_semantics<parallel>], iteration_bounds = array<i64: 2, 1>, scalar_prefetch = 0 : i64, scratch_operands = 0 : i64, tpu.core_type = #tpu.core_type<tc>, window_params = [{transform_indices = @transform_0, window_bounds = array<i64: 1, 4, 128>}, {transform_indices = @transform_1, window_bounds = array<i64: 1, 1, 4, 2>}, {pipeline_mode = #tpu.pipeline_mode<synchronous>, transform_indices = @transform_2, window_bounds = array<i64: 3, 4, 4>}, {pipeline_mode = #tpu.pipeline_mode<synchronous>, transform_indices = @transform_3, window_bounds = array<i64: 3, 4, 1>}, {transform_indices = @transform_4, window_bounds = array<i64: 1, 4, 128>}]} {
    %c0 = arith.constant 0 : index
    %c0_0 = arith.constant 0 : index
    %c0_1 = arith.constant 0 : index
    %0 = vector.load %arg2[%c0, %c0_0, %c0_1] : memref<1x4x128xf32, #tpu.memory_space<vmem>>, vector<1x4x128xf32>
    %1 = vector.shape_cast %0 : vector<1x4x128xf32> to vector<4x128xf32>
    %c0_2 = arith.constant 0 : index
    %c0_3 = arith.constant 0 : index
    %c0_4 = arith.constant 0 : index
    %c0_5 = arith.constant 0 : index
    %2 = vector.load %arg3[%c0_2, %c0_3, %c0_4, %c0_5] : memref<1x1x4x2xf32, #tpu.memory_space<vmem>>, vector<1x1x4x2xf32>
    %3 = vector.shape_cast %2 : vector<1x1x4x2xf32> to vector<4x2xf32>
    %4 = vector.extract_strided_slice %3 {offsets = [0, 0], sizes = [4, 1], strides = [1, 1]} : vector<4x2xf32> to vector<4x1xf32>
    %5 = vector.extract_strided_slice %3 {offsets = [0, 1], sizes = [4, 1], strides = [1, 1]} : vector<4x2xf32> to vector<4x1xf32>
    %6 = vector.extract_strided_slice %1 {offsets = [0, 0], sizes = [4, 127], strides = [1, 1]} : vector<4x128xf32> to vector<4x127xf32>
    %7 = tpu.concatenate %4, %6 in 1 : vector<4x1xf32>, vector<4x127xf32> -> vector<4x128xf32>
    %8 = vector.extract_strided_slice %1 {offsets = [0, 1], sizes = [4, 127], strides = [1, 1]} : vector<4x128xf32> to vector<4x127xf32>
    %9 = tpu.concatenate %8, %5 in 1 : vector<4x127xf32>, vector<4x1xf32> -> vector<4x128xf32>
    %c1 = arith.constant 1 : index
    %c0_6 = arith.constant 0 : index
    %c0_7 = arith.constant 0 : index
    %10 = vector.load %arg4[%c1, %c0_6, %c0_7] : memref<3x4x4xf32, #tpu.memory_space<vmem>>, vector<1x4x4xf32>
    %11 = vector.shape_cast %10 : vector<1x4x4xf32> to vector<4x4xf32>
    %cst = arith.constant dense<0.000000e+00> : vector<4x128xf32>
    %12 = tpu.matmul %11, %1, %cst {dimension_numbers = #tpu.dot_dimension_numbers<[1], [0], [0], [1], [0, 0, 1, 1], [], []>} : vector<4x4xf32>, vector<4x128xf32>, vector<4x128xf32> -> vector<4x128xf32>
    %c0_8 = arith.constant 0 : index
    %c0_9 = arith.constant 0 : index
    %c0_10 = arith.constant 0 : index
    %13 = vector.load %arg4[%c0_8, %c0_9, %c0_10] : memref<3x4x4xf32, #tpu.memory_space<vmem>>, vector<1x4x4xf32>
    %14 = vector.shape_cast %13 : vector<1x4x4xf32> to vector<4x4xf32>
    %cst_11 = arith.constant dense<0.000000e+00> : vector<4x128xf32>
    %15 = tpu.matmul %14, %7, %cst_11 {dimension_numbers = #tpu.dot_dimension_numbers<[1], [0], [0], [1], [0, 0, 1, 1], [], []>} : vector<4x4xf32>, vector<4x128xf32>, vector<4x128xf32> -> vector<4x128xf32>
    %16 = arith.addf %12, %15 : vector<4x128xf32>
    %c2 = arith.constant 2 : index
    %c0_12 = arith.constant 0 : index
    %c0_13 = arith.constant 0 : index
    %17 = vector.load %arg4[%c2, %c0_12, %c0_13] : memref<3x4x4xf32, #tpu.memory_space<vmem>>, vector<1x4x4xf32>
    %18 = vector.shape_cast %17 : vector<1x4x4xf32> to vector<4x4xf32>
    %cst_14 = arith.constant dense<0.000000e+00> : vector<4x128xf32>
    %19 = tpu.matmul %18, %9, %cst_14 {dimension_numbers = #tpu.dot_dimension_numbers<[1], [0], [0], [1], [0, 0, 1, 1], [], []>} : vector<4x4xf32>, vector<4x128xf32>, vector<4x128xf32> -> vector<4x128xf32>
    %20 = arith.addf %16, %19 : vector<4x128xf32>
    %c0_15 = arith.constant 0 : index
    %c0_16 = arith.constant 0 : index
    %c0_17 = arith.constant 0 : index
    %21 = vector.load %arg5[%c0_15, %c0_16, %c0_17] : memref<3x4x1xf32, #tpu.memory_space<vmem>>, vector<1x4x1xf32>
    %22 = vector.shape_cast %21 : vector<1x4x1xf32> to vector<4x1xf32>
    %23 = vector.broadcast %22 : vector<4x1xf32> to vector<4x128xf32>
    %24 = arith.addf %20, %23 : vector<4x128xf32>
    %cst_18 = arith.constant dense<0.000000e+00> : vector<128xf32>
    %25 = vector.multi_reduction <add>, %24, %cst_18 [0] : vector<4x128xf32> to vector<128xf32>
    %26 = vector.shape_cast %25 : vector<128xf32> to vector<1x128xf32>
    %cst_19 = arith.constant 4.000000e+00 : f32
    %27 = vector.broadcast %cst_19 : f32 to vector<1x128xf32>
    %28 = arith.divf %26, %27 : vector<1x128xf32>
    %29 = vector.broadcast %28 : vector<1x128xf32> to vector<4x128xf32>
    %30 = arith.subf %24, %29 : vector<4x128xf32>
    %31 = arith.mulf %30, %30 : vector<4x128xf32>
    %cst_20 = arith.constant dense<0.000000e+00> : vector<128xf32>
    %32 = vector.multi_reduction <add>, %31, %cst_20 [0] : vector<4x128xf32> to vector<128xf32>
    %33 = vector.shape_cast %32 : vector<128xf32> to vector<1x128xf32>
    %cst_21 = arith.constant 4.000000e+00 : f32
    %34 = vector.broadcast %cst_21 : f32 to vector<1x128xf32>
    %35 = arith.divf %33, %34 : vector<1x128xf32>
    %cst_22 = arith.constant 9.99999974E-6 : f32
    %36 = vector.broadcast %cst_22 : f32 to vector<1x128xf32>
    %37 = arith.addf %35, %36 : vector<1x128xf32>
    %38 = math.rsqrt %37 : vector<1x128xf32>
    %39 = vector.broadcast %38 : vector<1x128xf32> to vector<4x128xf32>
    %40 = arith.mulf %30, %39 : vector<4x128xf32>
    %c1_23 = arith.constant 1 : index
    %c0_24 = arith.constant 0 : index
    %c0_25 = arith.constant 0 : index
    %41 = vector.load %arg5[%c1_23, %c0_24, %c0_25] : memref<3x4x1xf32, #tpu.memory_space<vmem>>, vector<1x4x1xf32>
    %42 = vector.shape_cast %41 : vector<1x4x1xf32> to vector<4x1xf32>
    %43 = vector.broadcast %42 : vector<4x1xf32> to vector<4x128xf32>
    %44 = arith.mulf %40, %43 : vector<4x128xf32>
    %c2_26 = arith.constant 2 : index
    %c0_27 = arith.constant 0 : index
    %c0_28 = arith.constant 0 : index
    %45 = vector.load %arg5[%c2_26, %c0_27, %c0_28] : memref<3x4x1xf32, #tpu.memory_space<vmem>>, vector<1x4x1xf32>
    %46 = vector.shape_cast %45 : vector<1x4x1xf32> to vector<4x1xf32>
    %47 = vector.broadcast %46 : vector<4x1xf32> to vector<4x128xf32>
    %48 = arith.addf %44, %47 : vector<4x128xf32>
    %49 = math.absf %48 : vector<4x128xf32>
    %cst_29 = arith.constant 0.000000e+00 : f32
    %50 = vector.broadcast %cst_29 : f32 to vector<4x128xf32>
    %51 = arith.subf %50, %49 : vector<4x128xf32>
    %52 = math.exp %51 : vector<4x128xf32>
    %53 = arith.mulf %52, %52 : vector<4x128xf32>
    %54 = arith.addf %52, %52 : vector<4x128xf32>
    %cst_30 = arith.constant 0.000000e+00 : f32
    %55 = vector.broadcast %cst_30 : f32 to vector<4x128xf32>
    %56 = arith.cmpf oge, %48, %55 : vector<4x128xf32>
    %cst_31 = arith.constant 1.000000e+00 : f32
    %57 = vector.broadcast %cst_31 : f32 to vector<4x128xf32>
    %58 = arith.select %56, %57, %53 : vector<4x128xi1>, vector<4x128xf32>
    %59 = arith.addf %58, %54 : vector<4x128xf32>
    %60 = arith.addf %53, %53 : vector<4x128xf32>
    %cst_32 = arith.constant 2.000000e+00 : f32
    %61 = vector.broadcast %cst_32 : f32 to vector<4x128xf32>
    %62 = arith.select %56, %60, %61 : vector<4x128xi1>, vector<4x128xf32>
    %63 = arith.addf %59, %62 : vector<4x128xf32>
    %64 = arith.divf %59, %63 : vector<4x128xf32>
    %65 = arith.mulf %48, %64 : vector<4x128xf32>
    %66 = arith.addf %1, %65 : vector<4x128xf32>
    %c0_33 = arith.constant 0 : index
    %c0_34 = arith.constant 0 : index
    %c0_35 = arith.constant 0 : index
    %67 = vector.load %arg6[%c0_33, %c0_34, %c0_35] : memref<1x4x128xf32, #tpu.memory_space<vmem>>, vector<1x4x128xf32>
    %68 = vector.shape_cast %67 : vector<1x4x128xf32> to vector<4x128xf32>
    %69 = vector.shape_cast %66 : vector<4x128xf32> to vector<1x4x128xf32>
    tpu.vector_store %arg6[%c0_33, %c0_34, %c0_35], %69 {strides = array<i32>} : memref<1x4x128xf32, #tpu.memory_space<vmem>>, vector<1x4x128xf32>,
    return
  }
  func.func @transform_0(%arg0: i32, %arg1: i32) -> (i32, i32, i32) {
    %c0_i32 = arith.constant 0 : i32
    %c0_i32_0 = arith.constant 0 : i32
    return %arg0, %c0_i32, %arg1 : i32, i32, i32
  }
  func.func @transform_1(%arg0: i32, %arg1: i32) -> (i32, i32, i32, i32) {
    %c0_i32 = arith.constant 0 : i32
    %c0_i32_0 = arith.constant 0 : i32
    %c0_i32_1 = arith.constant 0 : i32
    return %arg0, %arg1, %c0_i32, %c0_i32_0 : i32, i32, i32, i32
  }
  func.func @transform_2(%arg0: i32, %arg1: i32) -> (i32, i32, i32) {
    %c0_i32 = arith.constant 0 : i32
    %c0_i32_0 = arith.constant 0 : i32
    %c0_i32_1 = arith.constant 0 : i32
    %c0_i32_2 = arith.constant 0 : i32
    return %c0_i32, %c0_i32_0, %c0_i32_1 : i32, i32, i32
  }
  func.func @transform_3(%arg0: i32, %arg1: i32) -> (i32, i32, i32) {
    %c0_i32 = arith.constant 0 : i32
    %c0_i32_0 = arith.constant 0 : i32
    %c0_i32_1 = arith.constant 0 : i32
    %c0_i32_2 = arith.constant 0 : i32
    return %c0_i32, %c0_i32_0, %c0_i32_1 : i32, i32, i32
  }
  func.func @transform_4(%arg0: i32, %arg1: i32) -> (i32, i32, i32) {
    %c0_i32 = arith.constant 0 : i32
    %c0_i32_0 = arith.constant 0 : i32
    return %arg0, %c0_i32, %arg1 : i32, i32, i32
  }
}

</mosaic_0001>

<bundles_post_ra>
// kernel: tpu_custom_call.1
= control target key start
LH: loop header
LB: loop body
LE: loop exit
PB: predicated region body
PF: predicated region fallthrough
CT: control target
= control target key end

     0   :  { %9 = vsyncpa [#allocation3], 0  ;;  %s1035_s0 = inlined_call_operand.vmem [shape: f32[2,4,128], index: 0, kind: input, shape index: {}]   ;;  %s1036_s1 = inlined_call_operand.vmem [shape: f32[2,1,4,2], index: 1, kind: input, shape index: {}]   ;;  %s1037_s2 = inlined_call_operand.vmem [shape: f32[3,4,4], index: 2, kind: input, shape index: {}]   ;;  %s1038_s3 = inlined_call_operand.vmem [shape: f32[3,4,1], index: 3, kind: input, shape index: {}]   ;;  %s1039_s4 = inlined_call_operand.hbm [shape: f32[2,4,128], index: 4, kind: output, shape index: {}]  }
   0x1   :  { %11 = vsyncpa [#allocation3 + $0x1], 0  ;;  %s885_s15 = smov 0   ;;  %s887_s16 = smov 0  }
   0x2   :  { %s889_s17 = smov 0   ;;  %s891_s18 = smov 0  }
   0x3   :  { %s893_s19 = smov 0   ;;  %s895_s20 = smov 0  }
   0x4 LB: > { %s661_s21 = sadd.s32 4294967295, %s851_s20   ;;  %s662_s22 = sadd.s32 4294967294, %s851_s20   ;;  %s851_s20 = sphi %s895_s20, %s17_s20   ;;  %s847_s19 = sphi %s893_s19, %s1046_s19   ;;  %s843_s18 = sphi %s891_s18, %s1045_s18   ;;  %s839_s17 = sphi %s889_s17, %s1044_s17   ;;  %s835_s16 = sphi %s887_s16, %s1043_s16   ;;  %s831_s15 = sphi %s885_s15, %s1042_s15  }
   0x5   : > { %s29_s23 = sadd.s32 1, %s847_s19  ;;  %s136_s24 = sadd.s32 1, %s839_s17 }
   0x6   : > { %p31_p0 = scmp.ge.s32.totalorder %s29_s23, 2  ;;  %p146_p1 = scmp.ne.s32.totalorder %s839_s17, %s835_s16 }
   0x7   : > { %p147_p2 = scmp.eq.s32.totalorder %s661_s21, 1  ;;  %p152_p3 = scmp.ne.s32.totalorder %s835_s16, %s831_s15 }
   0x8   : > { %s1048_s23 = smov (%p31_p0, %s29_s23), 0  ;;  %p153_p5 = scmp.eq.s32.totalorder %s662_s22, 1 }
   0x9   : > { %p925_p4 = por %p147_p2, %p146_p1  ;;  %s131_s26 = ssub.s32 %s847_s19, %s1048_s23 }
   0xa   : > { %p665_p6 = scmp.ge.s32.totalorder %s851_s20, 1  ;;  %p134_p7 = scmp.eq.s32.totalorder %s131_s26, 0 }
   0xb   : > { %p932_p8 = por %p153_p5, %p152_p3  ;;  %p197_p9 = scmp.lt.s32.totalorder %s851_s20, 3 }
   0xc   : > { %s938_s28 = scalar_select %p134_p7, %s839_s17, %s136_s24  }
   0xd   : > { %p198_p10 = pnand %p665_p6, %p197_p9 }
   0xe   : > { %p232_p11 = scmp.lt.s32.totalorder (!%p198_p10), %s843_s18, 1  ;;  %v853_v0 = vmov (!%p198_p10), 0.0   ;;  %vm854_vm0 = vmmov (!%p198_p10), 0   ;;  %v855_v1 = vmov (!%p198_p10), 0   ;;  %vm270_vm1 = vcmask (!%p198_p10), 1043456   ;;  %s856_s13 = smov (!%p198_p10), 1  }
   0xf   : > { %201 = sbr.rel (%p198_p10) target bundleno = 472 (0x1d8), region = 36  ;;  %689 = vmatprep.subr.mxu0 (!%p198_p10), %v853_v0  ;;  %691 = vmatprep.mubr.msk.f32.mxu0 (!%p198_p10), %vm854_vm0, %v853_v0  ;;  %vm266_vm2 = vcmask (!%p198_p10), 31744   ;;  %v669_v4 = vld [vmem:[%s1037_s2 + $0x4] sm:$0xf] (!%p198_p10)  ;;  %s857_s14 = smov (!%p198_p10), 126   ;;  %vm252_vm3 = vcmask (!%p198_p10), 7168  }
  0x10   : > { %694 = vmatprep.subr.mxu1 (!%p198_p10), %v853_v0  ;;  %696 = vmatprep.mubr.msk.f32.mxu1 (!%p198_p10), %vm854_vm0, %v853_v0  ;;  %v498_v5 = vld [vmem:[%s1038_s3] sm:$0xf] (!%p198_p10)  ;;  %s858_s24 = smov (!%p198_p10), 127   ;;  %v678_v6 = vld [vmem:[%s1038_s3 + $0x8] sm:$0xf] (!%p198_p10)  ;;  %vm261_vm4 = vcmask (!%p198_p10), 1039360  }
  0x11   : > { %765 = vset.pattern.permute.xlu1 (!%p198_p10), %v855_v1  ;;  %766 = vset.pattern.permute.xlu0 (!%p198_p10), %v855_v1  ;;  %v677_v7 = vld [vmem:[%s1038_s3 + $0x4] sm:$0xf] (!%p198_p10)  ;;  %v265_v9 = vld [vmem:[%s1037_s2] sm:$0xf] (!%p198_p10)  ;;  %v674_v13 = vld [vmem:[%s1037_s2 + $0x8] sm:$0xf] (!%p198_p10) }
  0x12   : > { %s680_s12 = sshll.u32 (!%p198_p10), %s843_s18, 6 }
  0x16   : > { %s233_s29 = scalar_select %p232_p11, %s843_s18, 1 }
  0x17   : > { %s859_s18 = smov [#allocation2]  }
  0x18   : > { %s667_s30 = sshll.u32 %s233_s29, 2 }
  0x19   : > { %s238_s7 = scalar_lea.vmem %s1035_s0, %s667_s30  ;;  %s245_s10 = scalar_lea.vmem %s1036_s1, %s667_s30 }
  0x1a   : > { %v950_v2 = vld [vmem:[%s238_s7] sm:$0xf]  ;;  %s777_s30 = sshll.u32 %s859_s18, 4  ;;  %s778_s30 = int_to_ptr.vmem [resolvable:$false] %s777_s30 }
  0x1b   : > { %v247_v3 = vld [vmem:[%s245_s10] sm:$0xf]  ;;  %249 = vrot.lane.b32.xlu0 %v950_v2, %s856_s13  ;;  %695 = vmatpush3.msk.msra.mxu1 %vm270_vm1, %v950_v2  ;;  %s229_s10 = sand.u32 1, %s835_s16   ;;  %s779_s5 = scalar_lea.vmem %s778_s30, 128 }
  0x1c   : > { %258 = vrot.lane.b32.xlu1 %v247_v3, %s857_s14  ;;  %697 = vmatmul.mubr.msk.f32.vlgmr.msra.gmra.mrb[0].mxu1 %vm266_vm2, %v669_v4  ;;  %s666_s11 = sshll.u32 %s229_s10, 2  ;;  %s561_s26 = scalar_lea.sflag [#allocation3], %s229_s10 }
  0x1d   : > { %s231_s13 = scalar_lea.vmem [#allocation2], %s666_s11 }
  0x1e   : > { %s575_s14 = sshll.u32 %s231_s13, 4  ;;  %s990_s14 = int_to_ptr.vmem [resolvable:$true] %s575_s14 }
  0x1f   : > { %254 = vrot.lane.b32.xlu0 %v950_v2, %s858_s24  ;;  %s988_s24 = scalar_lea.hbm %s1039_s4, %s680_s12  ;;  %s773_s29 = scalar_lea.vmem %s990_s14, 64 }
  0x20   : > { %501 = vperm.xlu1 %765, %v498_v5   ;;  %p774_p12 = scmp.ne.s32.totalorder %s990_s14, %s773_s29  ;;  %p780_p1 = scmp.lt.s32.totalorder %s990_s14, %s778_s30 }
  0x21   : > { %p781_p2 = scmp.lt.s32.totalorder %s779_s5, %s773_s29 }
  0x22   : > { %p775_p13 = pnand %p774_p12, %p925_p4 }
  0x23   : > { %531 = vperm.xlu0 %766, %v677_v7   ;;  %p782_p3 = por %p781_p2, %p780_p1 }
  0x24   : > { %539 = vperm.xlu1 %765, %v678_v6   ;;  %p776_p0 = pneg %p775_p13 }
  0x26   : > { %p783_p5 = pnand %p782_p3, %p776_p0 }
  0x8d   : > { %v250_v8 = vpop.permute.xlu0 %249 }
  0x8e   : > { %v253_v10 = vsel %vm252_vm3, %v247_v3, %v250_v8  ;;  %v259_v11 = vpop.permute.xlu1 %258 }
  0x8f   : > { %690 = vmatpush3.msk.msra.mxu0 %vm270_vm1, %v253_v10 }
  0x90   : > { %692 = vmatmul.mubr.msk.f32.vlgmr.msra.gmra.mrb[0].mxu0 %vm266_vm2, %v265_v9  ;;  %699 = vmatprep.subr.mxu0 %v853_v0 }
  0x91   : > { %v255_v12 = vpop.permute.xlu0 %254  ;;  %701 = vmatprep.mubr.msk.f32.mxu0 %vm854_vm0, %v853_v0 }
  0x92   : > { %v262_v14 = vsel %vm261_vm4, %v255_v12, %v259_v11 }
  0x93   : > { %700 = vmatpush3.msk.msra.mxu0 %vm270_vm1, %v262_v14 }
  0x94   : > { %702 = vmatmul.mubr.msk.f32.vlgmr.msra.gmra.mrb[2].mxu0 %vm266_vm2, %v674_v13 }
  0x9f   : > { %v502_v23 = vpop.permute.xlu1 %501 }
  0xa2   : > { %v532_v45 = vpop.permute.xlu0 %531 }
  0xa3   : > { %v540_v48 = vpop.permute.xlu1 %539 }
  0xef   : > { %v415_v15 = vpop.f32.mrb[0].mxu1 }
  0xf0   : > { %v698_v16 = vpop.f32.mrb[1].mxu1 }
 0x163   : > { %v340_v17 = vpop.f32.mrb[0].mxu0 }
 0x164   : > { %v416_v18 = vadd.f32 %v415_v15, %v340_v17  ;;  %v693_v19 = vpop.f32.mrb[1].mxu0 }
 0x167   : > { %v493_v20 = vpop.f32.mrb[2].mxu0 }
 0x168   : > { %v497_v21 = vadd.f32 %v493_v20, %v416_v18  ;;  %v703_v22 = vpop.f32.mrb[3].mxu0 }
 0x16a   : > { %v504_v24 = vadd.f32 %v502_v23, %v497_v21 }
 0x16c   : > { %v505_v25 = vsel %vm270_vm1, %v504_v24, 0.0 }
 0x16d   : > { %v506_v26 = vrot.slane %v505_v25, 4 }
 0x16f   : > { %v507_v27 = vadd.f32 %v506_v26, %v505_v25 }
 0x171   : > { %v508_v28 = vrot.slane %v507_v27, 2 }
 0x173   : > { %v509_v29 = vadd.f32 %v508_v28, %v507_v27 }
 0x175   : > { %v510_v30 = vrot.slane %v509_v29, 1 }
 0x177   : > { %v511_v31 = vadd.f32 %v510_v30, %v509_v29 }
 0x179   : > { %v513_v32 = vmul.f32 0.25, %v511_v31 }
 0x17b   : > { %v514_v33 = vsub.f32 %v504_v24, %v513_v32 }
 0x17d   : > { %v515_v34 = vmul.f32 %v514_v33, %v514_v33 }
 0x17f   : > { %v516_v35 = vsel %vm270_vm1, %v515_v34, 0.0 }
 0x180   : > { %v517_v36 = vrot.slane %v516_v35, 4 }
 0x182   : > { %v518_v37 = vadd.f32 %v517_v36, %v516_v35 }
 0x184   : > { %v519_v38 = vrot.slane %v518_v37, 2 }
 0x186   : > { %v520_v39 = vadd.f32 %v519_v38, %v518_v37 }
 0x188   : > { %v521_v40 = vrot.slane %v520_v39, 1 }
 0x18a   : > { %v522_v41 = vadd.f32 %v521_v40, %v520_v39 }
 0x18c   : > { %v523_v42 = vmul.f32 0.25, %v522_v41 }
 0x18e   : > { %v524_v43 = vadd.f32 1e-05, %v523_v42 }
 0x190   : > { %767 = vrsqrt.f32 %v524_v43 }
 0x19a   : > { %v768_v44 = vpop.eup %767 }
 0x19b   : > { %v526_v46 = vmul.f32 %v768_v44, %v514_v33 }
 0x19d   : > { %v534_v47 = vmul.f32 %v532_v45, %v526_v46 }
 0x19f   : > { %v542_v49 = vadd.f32 %v540_v48, %v534_v47 }
 0x1a1   : > { %v543_v50 = vand.u32 2147483647, %v542_v49  ;;  %vm549_vm5 = vcmp.ge.f32.partialorder %v542_v49, 0.0 }
 0x1a3   : > { %v544_v51 = vsub.f32 0.0, %v543_v50 }
 0x1a5   : > { %v545_v52 = vmul.f32 1.442695, %v544_v51 }
 0x1a7   : > { %769 = vpow2.f32 %v545_v52 }
 0x1b1   : > { %v770_v53 = vpop.eup %769 }
 0x1b2   : > { %v547_v54 = vmul.f32 %v770_v53, %v770_v53  ;;  %v548_v55 = vadd.f32 %v770_v53, %v770_v53 }
 0x1b4   : > { %v550_v56 = vsel %vm549_vm5, 1.0, %v547_v54  ;;  %v552_v57 = vadd.f32 %v547_v54, %v547_v54 }
 0x1b5   : > { %v551_v58 = vadd.f32 %v550_v56, %v548_v55 }
 0x1b6   : > { %v553_v59 = vsel %vm549_vm5, %v552_v57, 2.0 }
 0x1b7   : > { %v554_v60 = vadd.f32 %v553_v59, %v551_v58 }
 0x1b9   : > { %771 = vrcp.f32 %v554_v60 }
 0x1c3   : > { %v772_v61 = vpop.eup %771 }
 0x1c4   : > { %v556_v62 = vmul.f32 %v772_v61, %v551_v58 }
 0x1c6   : > { %v557_v63 = vmul.f32 %v556_v62, %v542_v49 }
 0x1c8   : > { %v558_v0 = vadd.f32 %v557_v63, %v950_v2 }
 0x1ca   : > { %559 = vst [vmem:[%s231_s13] sm:$0xf] %v558_v0 }
 0x1cb   : > { %786 = shalt.err (!%p783_p5)
}
 0x1cc   : > { %s787_s6 = scalar_lea.hbm %s988_s24, 64  ;;  %s791_s9 = scalar_lea.hbm %s1039_s4, 128 }
 0x1cd   : > { %p788_p6 = scmp.ne.s32.totalorder %s988_s24, %s787_s6  ;;  %p792_p10 = scmp.lt.u32.totalorder %s988_s24, %s1039_s4 }
 0x1ce   : > { %p793_p11 = scmp.lt.u32.totalorder %s791_s9, %s787_s6  ;;  %p795_p13 = scmp.lt.u32.totalorder %s787_s6, %s988_s24 }
 0x1cf   : > { %p789_p7 = pnand %p788_p6, %p925_p4 }
 0x1d0   : > { %p794_p12 = por %p793_p11, %p792_p10 }
 0x1d1   : > { %p790_p9 = pneg %p789_p7 }
 0x1d2   : > { %p796_p0 = por %p795_p13, %p794_p12 }
 0x1d4   : > { %p797_p1 = pnand %p796_p0, %p790_p9 }
 0x1d6   : > { %800 = shalt.err (!%p797_p1)
}
 0x1d7   : > { %704 = dma.vmem_to_hbm [thread:$0]  (%p925_p4), %s990_s14, 64, %s988_s24, %s561_s26  }
 0x1d8 PF: > { %p710_p2 = scmp.ge.s32.totalorder %s851_s20, 2  ;;  %s587_s12 = sand.u32 1, %s831_s15  }
 0x1d9   : > { %s588_s13 = scalar_lea.sflag [#allocation3], %s587_s12 }
 0x1da   : > { %p707_p3 = pnand %p710_p2, %p932_p8 }
 0x1dc   : > { %826 = dma.done.wait (!%p707_p3), %s588_s13, 64  }
 0x1dd   : > { %828 = vsyncadd (!%p707_p3), %s588_s13, 4294967232  ;;  %s17_s20 = sadd.s32 1, %s851_s20   ;;  %s1042_s15 = smov %s835_s16 }
 0x1de   : > { %p14_p5 = scmp.ge.s32.totalorder %s17_s20, 4   ;;  %s1043_s16 = smov %s839_s17 }
 0x1df   : > { %s1044_s17 = smov %s938_s28  ;;  %s1045_s18 = smov %s847_s19 }
 0x1e0   : > { %s1046_s19 = smov %s1048_s23  ;;  %16 = sbr.rel (!%p14_p5) target bundleno = 4 (0x4), region = 78 }
 0x1e7   :  { %593 = vsyncpa [#allocation3], 1 }
 0x1e8   :  { %595 = vsyncpa [#allocation3 + $0x1], 1 }

</bundles_post_ra>
